<compile_context>
chip_gen: v5e
topology: v5e:2x2
jax: 0.10.0
libtpu: 0.0.40
codegen_flags: <defaults>
</compile_context>

<pallas_src>
import functools

import jax
import jax.numpy as jnp
from jax.experimental import pallas as pl
from jax.experimental.pallas import tpu as pltpu

M = 2025  # 45 x 45 folding grid (fixed by the module)
HP = jax.lax.Precision.HIGHEST


def _build_grid_points():
    # Matches np.array(list(itertools.product(x, y))), x = y = linspace(-3, 3, 45):
    # first coordinate varies slowest -> meshgrid with indexing="ij".
    lin = jnp.linspace(-3.0, 3.0, 45, dtype=jnp.float32)
    gx, gy = jnp.meshgrid(lin, lin, indexing="ij")
    return jnp.stack([gx.reshape(-1), gy.reshape(-1)], axis=-1)  # (2025, 2)


def foldnet_kernel(fpc_ref, ptsp_ref, w2t_ref, w34t_ref, w5t_ref, w6t_ref,
                   bcols_ref, out_ref):
    """One (batch, point-tile) step. Channel-first (nf, TM) layout in VMEM.

    fpc_ref   : (1, nf, 2)  per-batch projections: [:,0]=x@w1a, [:,1]=x@w4a+b3@w4b+b4
    ptsp_ref  : (nf, TM)    (pts @ w1b + b1).T  — batch invariant, precomputed
    w2t_ref   : (nf, nf)    folding1.conv2 weight, transposed
    w34t_ref  : (nf, nf)    (w3 @ w4b).T — fused folding1.conv3 / folding2.conv1
    w5t_ref   : (nf, nf)    folding2.conv2 weight, transposed
    w6t_ref   : (3, nf)     folding2.conv3 weight, transposed
    bcols_ref : (nf, 3)     columns: b2, b5, b6 (zero-padded to nf)
    out_ref   : (1, 3, TM)  lane-dense transposed output tile
    """
    cdt = w2t_ref.dtype                      # matmul operand dtype (bf16 or f32)
    fp = fpc_ref[0]                          # (nf, 2) f32
    hp = ptsp_ref[...]                       # (nf, TM) f32

    # folding1: conv1 + ReLU   (feat@w1a + pts@w1b + b1, both terms precomputed)
    h = jnp.maximum(hp + fp[:, 0:1], 0.0)
    # folding1: conv2 + ReLU
    h = jnp.dot(w2t_ref[...], h.astype(cdt), preferred_element_type=jnp.float32)
    h = jnp.maximum(h + bcols_ref[:, 0:1], 0.0)
    # folding1.conv3 fused with folding2.conv1 (+ ReLU): g = W34^T @ h + (x@w4a + b34)
    g = jnp.dot(w34t_ref[...], h.astype(cdt), preferred_element_type=jnp.float32)
    g = jnp.maximum(g + fp[:, 1:2], 0.0)
    # folding2: conv2 + ReLU
    g = jnp.dot(w5t_ref[...], g.astype(cdt), preferred_element_type=jnp.float32)
    g = jnp.maximum(g + bcols_ref[:, 1:2], 0.0)
    # folding2: conv3 (no activation)
    f2 = jnp.dot(w6t_ref[...], g.astype(cdt), preferred_element_type=jnp.float32)
    out_ref[0] = (f2 + bcols_ref[0:3, 2:3]).astype(out_ref.dtype)   # (3, TM)


def init_params(key, nf):
    """Deterministic synthetic weights. Conv1d(k=1) weights stored transposed as
    (C_in, C_out); the cat-dim split already applied (a = feature rows,
    b = points / fold1 rows)."""
    ks = jax.random.split(key, 14)
    s = 0.1
    w1a = s * jax.random.normal(ks[0], (nf, nf), jnp.float32)
    w1b = s * jax.random.normal(ks[1], (2, nf), jnp.float32)
    b1 = s * jax.random.normal(ks[2], (1, nf), jnp.float32)
    w2 = s * jax.random.normal(ks[3], (nf, nf), jnp.float32)
    b2 = s * jax.random.normal(ks[4], (1, nf), jnp.float32)
    w3 = s * jax.random.normal(ks[5], (nf, 3), jnp.float32)
    b3 = s * jax.random.normal(ks[6], (1, 3), jnp.float32)
    w4a = s * jax.random.normal(ks[7], (nf, nf), jnp.float32)
    w4b = s * jax.random.normal(ks[8], (3, nf), jnp.float32)
    b4 = s * jax.random.normal(ks[9], (1, nf), jnp.float32)
    w5 = s * jax.random.normal(ks[10], (nf, nf), jnp.float32)
    b5 = s * jax.random.normal(ks[11], (1, nf), jnp.float32)
    w6 = s * jax.random.normal(ks[12], (nf, 3), jnp.float32)
    b6 = s * jax.random.normal(ks[13], (1, 3), jnp.float32)
    return (w1a, w1b, b1, w2, b2, w3, b3, w4a, w4b, b4, w5, b5, w6, b6)


@functools.partial(jax.jit, static_argnames=("compute_dtype", "tm"))
def foldnet_decoder_forward(x, params, *, compute_dtype=jnp.bfloat16, tm=512):
    """x: (B, 1, num_features) float32 -> (B, 2025, 3) float32.

    compute_dtype: dtype of MXU matmul operands (bf16 recommended on v5e/v6e/v7x;
    accumulation and all elementwise work stay f32).
    tm: point-tile size (multiple of 128)."""
    B, _, nf = x.shape
    (w1a, w1b, b1, w2, b2, w3, b3, w4a, w4b, b4, w5, b5, w6, b6) = params

    m_tiles = (M + tm - 1) // tm
    m_pad = m_tiles * tm
    f32 = jnp.float32

    # ---- wrapper-side precompute (tiny XLA matmuls, done once per call) ----
    pts = _build_grid_points()                                    # (M, 2)
    pts_proj = jnp.dot(pts, w1b, precision=HP) + b1               # (M, nf)
    pts_proj_t = jnp.pad(pts_proj, ((0, m_pad - M), (0, 0))).T    # (nf, m_pad)

    w34 = jnp.dot(w3, w4b, precision=HP)                          # (nf, nf) fused
    b34 = jnp.dot(b3, w4b, precision=HP) + b4                     # (1, nf)

    xf = x[:, 0, :].astype(f32)                                   # (B, nf)
    fp1 = jnp.dot(xf, w1a, precision=HP)                          # (B, nf)
    fp2 = jnp.dot(xf, w4a, precision=HP) + b34                    # (B, nf)
    fpc = jnp.stack([fp1, fp2], axis=-1)                          # (B, nf, 2)

    b6col = jnp.concatenate([b6[0], jnp.zeros((nf - 3,), f32)])   # (nf,)
    bcols = jnp.stack([b2[0], b5[0], b6col], axis=-1)             # (nf, 3)

    w2t = w2.T.astype(compute_dtype)
    w34t = w34.T.astype(compute_dtype)
    w5t = w5.T.astype(compute_dtype)
    w6t = w6.T.astype(compute_dtype)

    grid_spec = pltpu.PrefetchScalarGridSpec(
        num_scalar_prefetch=0,
        grid=(B, m_tiles),
        in_specs=[
            pl.BlockSpec((1, nf, 2), lambda b, m: (b, 0, 0)),   # per-batch projections
            pl.BlockSpec((nf, tm), lambda b, m: (0, m)),        # precomputed point slab
            pl.BlockSpec((nf, nf), lambda b, m: (0, 0)),        # w2^T
            pl.BlockSpec((nf, nf), lambda b, m: (0, 0)),        # (w3@w4b)^T
            pl.BlockSpec((nf, nf), lambda b, m: (0, 0)),        # w5^T
            pl.BlockSpec((3, nf), lambda b, m: (0, 0)),         # w6^T
            pl.BlockSpec((nf, 3), lambda b, m: (0, 0)),         # packed biases
        ],
        out_specs=pl.BlockSpec((1, 3, tm), lambda b, m: (b, 0, m)),
    )

    out_t = pl.pallas_call(
        foldnet_kernel,
        out_shape=jax.ShapeDtypeStruct((B, 3, m_pad), jnp.float32),
        grid_spec=grid_spec,
        compiler_params=pltpu.CompilerParams(
            dimension_semantics=("parallel", "parallel")),
    )(fpc, pts_proj_t, w2t, w34t, w5t, w6t, bcols)

    # Drop the 23 pad points and return the PyTorch layout (B, 2025, 3).
    return jnp.transpose(out_t[:, :, :M], (0, 2, 1))


def reference_forward(x, params):
    """Pure-JAX reference reproducing the PyTorch semantics (channel-last, unfused)."""
    B, _, nf = x.shape
    (w1a, w1b, b1, w2, b2, w3, b3, w4a, w4b, b4, w5, b5, w6, b6) = params
    pts = _build_grid_points()                              # (M, 2)
    feat = jnp.broadcast_to(x, (B, M, nf))                  # repeat(1,1,m), channel-last
    pts_b = jnp.broadcast_to(pts[None], (B, M, 2))

    cat1 = jnp.concatenate([feat, pts_b], axis=-1)          # == torch.cat((x, points), 1)
    w1 = jnp.concatenate([w1a, w1b], axis=0)
    h = jnp.maximum(jnp.einsum("bmi,ij->bmj", cat1, w1, precision=HP) + b1, 0.0)
    h = jnp.maximum(jnp.einsum("bmi,ij->bmj", h, w2, precision=HP) + b2, 0.0)
    f1 = jnp.einsum("bmi,ij->bmj", h, w3, precision=HP) + b3

    cat2 = jnp.concatenate([feat, f1], axis=-1)             # == torch.cat((x, fold1), 1)
    w4 = jnp.concatenate([w4a, w4b], axis=0)
    g = jnp.maximum(jnp.einsum("bmi,ij->bmj", cat2, w4, precision=HP) + b4, 0.0)
    g = jnp.maximum(jnp.einsum("bmi,ij->bmj", g, w5, precision=HP) + b5, 0.0)
    return jnp.einsum("bmi,ij->bmj", g, w6, precision=HP) + b6   # (B, M, 3)


if __name__ == "__main__":
    key = jax.random.PRNGKey(0)
    k_x, k_p = jax.random.split(key)

    B, NUM_FEATURES = 2, 32
    # Module input: (batch, 1, num_features) latent code, float32.
    x = jax.random.normal(k_x, (B, 1, NUM_FEATURES), jnp.float32)
    params = init_params(k_p, NUM_FEATURES)

    ref = reference_forward(x, params)

    # Exact-semantics check with f32 MXU matmuls (tight tolerance).
    out_f32 = jax.block_until_ready(
        foldnet_decoder_forward(x, params, compute_dtype=jnp.float32, tm=512))
    assert out_f32.shape == (B, M, 3), out_f32.shape
    err_f32 = float(jnp.max(jnp.abs(out_f32 - ref)))
    assert jnp.allclose(out_f32, ref, atol=1e-3, rtol=1e-3), err_f32

    # Default fast path: bf16 matmul operands, f32 accumulate / elementwise.
    out_bf16 = jax.block_until_ready(
        foldnet_decoder_forward(x, params, compute_dtype=jnp.bfloat16, tm=512))
    assert out_bf16.shape == (B, M, 3), out_bf16.shape
    err_bf16 = float(jnp.max(jnp.abs(out_bf16 - ref)))
    assert jnp.allclose(out_bf16, ref, atol=3e-2, rtol=3e-2), err_bf16

    print("KERNEL_OK")
</pallas_src>

<mosaic_0001>
module attributes {stable_mosaic.version = 11 : i64} {
  func.func @foldnet_kernel(%arg0: i32, %arg1: i32, %arg2: memref<1x32x2xf32, #tpu.memory_space<vmem>>, %arg3: memref<32x512xf32, #tpu.memory_space<vmem>>, %arg4: memref<32x32xf32, #tpu.memory_space<vmem>>, %arg5: memref<32x32xf32, #tpu.memory_space<vmem>>, %arg6: memref<32x32xf32, #tpu.memory_space<vmem>>, %arg7: memref<3x32xf32, #tpu.memory_space<vmem>>, %arg8: memref<32x3xf32, #tpu.memory_space<vmem>>, %arg9: memref<1x3x512xf32, #tpu.memory_space<vmem>>) attributes {dimension_semantics = [#tpu.dimension_semantics<parallel>, #tpu.dimension_semantics<parallel>], iteration_bounds = array<i64: 2, 4>, scalar_prefetch = 0 : i64, scratch_operands = 0 : i64, tpu.core_type = #tpu.core_type<tc>, window_params = [{transform_indices = @transform_0, window_bounds = array<i64: 1, 32, 2>}, {transform_indices = @transform_1, window_bounds = array<i64: 32, 512>}, {pipeline_mode = #tpu.pipeline_mode<synchronous>, transform_indices = @transform_2, window_bounds = array<i64: 32, 32>}, {pipeline_mode = #tpu.pipeline_mode<synchronous>, transform_indices = @transform_3, window_bounds = array<i64: 32, 32>}, {pipeline_mode = #tpu.pipeline_mode<synchronous>, transform_indices = @transform_4, window_bounds = array<i64: 32, 32>}, {pipeline_mode = #tpu.pipeline_mode<synchronous>, transform_indices = @transform_5, window_bounds = array<i64: 3, 32>}, {pipeline_mode = #tpu.pipeline_mode<synchronous>, transform_indices = @transform_6, window_bounds = array<i64: 32, 3>}, {transform_indices = @transform_7, window_bounds = array<i64: 1, 3, 512>}]} {
    %c0 = arith.constant 0 : index
    %c0_0 = arith.constant 0 : index
    %c0_1 = arith.constant 0 : index
    %0 = vector.load %arg2[%c0, %c0_0, %c0_1] : memref<1x32x2xf32, #tpu.memory_space<vmem>>, vector<1x32x2xf32>
    %1 = vector.shape_cast %0 : vector<1x32x2xf32> to vector<32x2xf32>
    %c0_2 = arith.constant 0 : index
    %c0_3 = arith.constant 0 : index
    %2 = vector.load %arg3[%c0_2, %c0_3] : memref<32x512xf32, #tpu.memory_space<vmem>>, vector<32x512xf32>
    %3 = vector.extract_strided_slice %1 {offsets = [0, 0], sizes = [32, 1], strides = [1, 1]} : vector<32x2xf32> to vector<32x1xf32>
    %4 = vector.broadcast %3 : vector<32x1xf32> to vector<32x512xf32>
    %5 = arith.addf %2, %4 : vector<32x512xf32>
    %cst = arith.constant 0.000000e+00 : f32
    %6 = vector.broadcast %cst : f32 to vector<32x512xf32>
    %7 = arith.maximumf %5, %6 : vector<32x512xf32>
    %c0_4 = arith.constant 0 : index
    %c0_5 = arith.constant 0 : index
    %8 = vector.load %arg4[%c0_4, %c0_5] : memref<32x32xf32, #tpu.memory_space<vmem>>, vector<32x32xf32>
    %cst_6 = arith.constant dense<0.000000e+00> : vector<32x512xf32>
    %9 = tpu.matmul %8, %7, %cst_6 {dimension_numbers = #tpu.dot_dimension_numbers<[1], [0], [0], [1], [0, 0, 1, 1], [], []>} : vector<32x32xf32>, vector<32x512xf32>, vector<32x512xf32> -> vector<32x512xf32>
    %c0_7 = arith.constant 0 : index
    %c0_8 = arith.constant 0 : index
    %10 = vector.load %arg8[%c0_7, %c0_8] : memref<32x3xf32, #tpu.memory_space<vmem>>, vector<32x1xf32>
    %11 = vector.broadcast %10 : vector<32x1xf32> to vector<32x512xf32>
    %12 = arith.addf %9, %11 : vector<32x512xf32>
    %cst_9 = arith.constant 0.000000e+00 : f32
    %13 = vector.broadcast %cst_9 : f32 to vector<32x512xf32>
    %14 = arith.maximumf %12, %13 : vector<32x512xf32>
    %c0_10 = arith.constant 0 : index
    %c0_11 = arith.constant 0 : index
    %15 = vector.load %arg5[%c0_10, %c0_11] : memref<32x32xf32, #tpu.memory_space<vmem>>, vector<32x32xf32>
    %cst_12 = arith.constant dense<0.000000e+00> : vector<32x512xf32>
    %16 = tpu.matmul %15, %14, %cst_12 {dimension_numbers = #tpu.dot_dimension_numbers<[1], [0], [0], [1], [0, 0, 1, 1], [], []>} : vector<32x32xf32>, vector<32x512xf32>, vector<32x512xf32> -> vector<32x512xf32>
    %17 = vector.extract_strided_slice %1 {offsets = [0, 1], sizes = [32, 1], strides = [1, 1]} : vector<32x2xf32> to vector<32x1xf32>
    %18 = vector.broadcast %17 : vector<32x1xf32> to vector<32x512xf32>
    %19 = arith.addf %16, %18 : vector<32x512xf32>
    %cst_13 = arith.constant 0.000000e+00 : f32
    %20 = vector.broadcast %cst_13 : f32 to vector<32x512xf32>
    %21 = arith.maximumf %19, %20 : vector<32x512xf32>
    %c0_14 = arith.constant 0 : index
    %c0_15 = arith.constant 0 : index
    %22 = vector.load %arg6[%c0_14, %c0_15] : memref<32x32xf32, #tpu.memory_space<vmem>>, vector<32x32xf32>
    %cst_16 = arith.constant dense<0.000000e+00> : vector<32x512xf32>
    %23 = tpu.matmul %22, %21, %cst_16 {dimension_numbers = #tpu.dot_dimension_numbers<[1], [0], [0], [1], [0, 0, 1, 1], [], []>} : vector<32x32xf32>, vector<32x512xf32>, vector<32x512xf32> -> vector<32x512xf32>
    %c0_17 = arith.constant 0 : index
    %c1 = arith.constant 1 : index
    %24 = vector.load %arg8[%c0_17, %c1] : memref<32x3xf32, #tpu.memory_space<vmem>>, vector<32x1xf32>
    %25 = vector.broadcast %24 : vector<32x1xf32> to vector<32x512xf32>
    %26 = arith.addf %23, %25 : vector<32x512xf32>
    %cst_18 = arith.constant 0.000000e+00 : f32
    %27 = vector.broadcast %cst_18 : f32 to vector<32x512xf32>
    %28 = arith.maximumf %26, %27 : vector<32x512xf32>
    %c0_19 = arith.constant 0 : index
    %c0_20 = arith.constant 0 : index
    %29 = vector.load %arg7[%c0_19, %c0_20] : memref<3x32xf32, #tpu.memory_space<vmem>>, vector<3x32xf32>
    %cst_21 = arith.constant dense<0.000000e+00> : vector<3x512xf32>
    %30 = tpu.matmul %29, %28, %cst_21 {dimension_numbers = #tpu.dot_dimension_numbers<[1], [0], [0], [1], [0, 0, 1, 1], [], []>} : vector<3x32xf32>, vector<32x512xf32>, vector<3x512xf32> -> vector<3x512xf32>
    %c0_22 = arith.constant 0 : index
    %c2 = arith.constant 2 : index
    %31 = vector.load %arg8[%c0_22, %c2] : memref<32x3xf32, #tpu.memory_space<vmem>>, vector<3x1xf32>
    %32 = vector.broadcast %31 : vector<3x1xf32> to vector<3x512xf32>
    %33 = arith.addf %30, %32 : vector<3x512xf32>
    %c0_23 = arith.constant 0 : index
    %c0_24 = arith.constant 0 : index
    %c0_25 = arith.constant 0 : index
    %34 = vector.load %arg9[%c0_23, %c0_24, %c0_25] : memref<1x3x512xf32, #tpu.memory_space<vmem>>, vector<1x3x512xf32>
    %35 = vector.shape_cast %34 : vector<1x3x512xf32> to vector<3x512xf32>
    %36 = vector.shape_cast %33 : vector<3x512xf32> to vector<1x3x512xf32>
    tpu.vector_store %arg9[%c0_23, %c0_24, %c0_25], %36 {strides = array<i32>} : memref<1x3x512xf32, #tpu.memory_space<vmem>>, vector<1x3x512xf32>,
    return
  }
  func.func @transform_0(%arg0: i32, %arg1: i32) -> (i32, i32, i32) {
    %c0_i32 = arith.constant 0 : i32
    %c0_i32_0 = arith.constant 0 : i32
    %c0_i32_1 = arith.constant 0 : i32
    return %arg0, %c0_i32, %c0_i32_0 : i32, i32, i32
  }
  func.func @transform_1(%arg0: i32, %arg1: i32) -> (i32, i32) {
    %c0_i32 = arith.constant 0 : i32
    %c0_i32_0 = arith.constant 0 : i32
    return %c0_i32, %arg1 : i32, i32
  }
  func.func @transform_2(%arg0: i32, %arg1: i32) -> (i32, i32) {
    %c0_i32 = arith.constant 0 : i32
    %c0_i32_0 = arith.constant 0 : i32
    %c0_i32_1 = arith.constant 0 : i32
    return %c0_i32, %c0_i32_0 : i32, i32
  }
  func.func @transform_3(%arg0: i32, %arg1: i32) -> (i32, i32) {
    %c0_i32 = arith.constant 0 : i32
    %c0_i32_0 = arith.constant 0 : i32
    %c0_i32_1 = arith.constant 0 : i32
    return %c0_i32, %c0_i32_0 : i32, i32
  }
  func.func @transform_4(%arg0: i32, %arg1: i32) -> (i32, i32) {
    %c0_i32 = arith.constant 0 : i32
    %c0_i32_0 = arith.constant 0 : i32
    %c0_i32_1 = arith.constant 0 : i32
    return %c0_i32, %c0_i32_0 : i32, i32
  }
  func.func @transform_5(%arg0: i32, %arg1: i32) -> (i32, i32) {
    %c0_i32 = arith.constant 0 : i32
    %c0_i32_0 = arith.constant 0 : i32
    %c0_i32_1 = arith.constant 0 : i32
    return %c0_i32, %c0_i32_0 : i32, i32
  }
  func.func @transform_6(%arg0: i32, %arg1: i32) -> (i32, i32) {
    %c0_i32 = arith.constant 0 : i32
    %c0_i32_0 = arith.constant 0 : i32
    %c0_i32_1 = arith.constant 0 : i32
    return %c0_i32, %c0_i32_0 : i32, i32
  }
  func.func @transform_7(%arg0: i32, %arg1: i32) -> (i32, i32, i32) {
    %c0_i32 = arith.constant 0 : i32
    %c0_i32_0 = arith.constant 0 : i32
    return %arg0, %c0_i32, %arg1 : i32, i32, i32
  }
}

</mosaic_0001>

<bundles_post_ra>
// kernel: foldnet_decoder_forward.1
= control target key start
LH: loop header
LB: loop body
LE: loop exit
PB: predicated region body
PF: predicated region fallthrough
CT: control target
= control target key end

     0   :  { %s1387_s24 = smov 0   ;;  %s1389_s25 = smov 0   ;;  %s1655_s0 = inlined_call_operand.vmem [shape: f32[2,32,2], index: 0, kind: input, shape index: {}]   ;;  %s1656_s1 = inlined_call_operand.vmem [shape: f32[32,2048], index: 1, kind: input, shape index: {}]   ;;  %s1657_s2 = inlined_call_operand.vmem [shape: f32[32,32], index: 2, kind: input, shape index: {}]   ;;  %s1658_s3 = inlined_call_operand.vmem [shape: f32[32,32], index: 3, kind: input, shape index: {}]   ;;  %s1659_s4 = inlined_call_operand.vmem [shape: f32[32,32], index: 4, kind: input, shape index: {}]   ;;  %s1660_s5 = inlined_call_operand.vmem [shape: f32[3,32], index: 5, kind: input, shape index: {}]   ;;  %s1661_s6 = inlined_call_operand.vmem [shape: f32[32,3], index: 6, kind: input, shape index: {}]   ;;  %s1662_s7 = inlined_call_operand.vmem [shape: f32[2,3,2048], index: 7, kind: output, shape index: {}]  }
   0x1   :  { %s1391_s26 = smov 0   ;;  %s1393_s27 = smov 0  }
   0x2   :  { %s1395_s28 = smov 0   ;;  %s1397_s29 = smov 0  }
   0x3   :  { %s1399_s30 = smov 0  }
   0x4 LB: > { %s26_s8 = sadd.s32 1, %s1334_s28  ;;  %s29_s9 = sadd.s32 1, %s1338_s29  ;;  %s1342_s30 = sphi %s1399_s30, %s17_s30   ;;  %s1338_s29 = sphi %s1397_s29, %s1668_s29   ;;  %s1334_s28 = sphi %s1395_s28, %s1667_s28   ;;  %s1330_s27 = sphi %s1393_s27, %s1666_s27   ;;  %s1326_s26 = sphi %s1391_s26, %s1665_s26   ;;  %s1322_s25 = sphi %s1389_s25, %s1664_s25   ;;  %s1318_s24 = sphi %s1387_s24, %s1663_s24  }
   0x5   : > { %p27_p0 = scmp.ge.s32.totalorder %s26_s8, 4  ;;  %s62_s10 = sadd.s32 1, %s1322_s25 }
   0x6   : > { %p69_p1 = scmp.ne.s32.totalorder %s1322_s25, %s1318_s24  ;;  %p70_p2 = scmp.eq.s32.totalorder %s1342_s30, 0 }
   0x7   : > { %s1670_s8 = smov (%p27_p0, %s26_s8), 0  ;;  %s1672_s9 = smov (!%p27_p0, %s29_s9), %s1338_s29 }
   0x8   : > { %s59_s11 = ssub.s32 %s1334_s28, %s1670_s8  ;;  %p71_p3 = por %p70_p2, %p69_p1 }
   0x9   : > { %p31_p4 = scmp.ge.s32.totalorder %s1672_s9, 2  ;;  %p60_p5 = scmp.eq.s32.totalorder %s59_s11, 0 }
   0xa   : > { %p1154_p6 = scmp.ge.s32.totalorder %s1342_s30, 8 }
   0xb   : > { %s1674_s9 = smov (%p31_p4, %s1672_s9), 0 }
   0xc   : > { %s1436_s12 = scalar_select %p60_p5, %s1322_s25, %s62_s10  }
   0xd   : > { %243 = sbr.rel (%p1154_p6) target bundleno = 38 (0x26), region = 36 }
  0x12   : > { %254 = sbr.rel (!%p71_p3) target bundleno = 38 (0x26), region = 44  ;;  %s256_s13 = sand.u32 (%p71_p3), 1, %s1322_s25  }
  0x13   : > { %s1219_s14 = sshll.u32 (%p71_p3), %s1334_s28, 5  ;;  %s1155_s15 = sshll.u32 (%p71_p3), %s256_s13, 7 }
  0x14   : > { %s1444_s18 = scalar_lea.vmem (%p71_p3), %s1656_s1, %s1219_s14  ;;  %s258_s19 = scalar_lea.vmem (%p71_p3), [#allocation2], %s1155_s15 }
  0x15   : > { %v274_v0 = vld [vmem:[%s1444_s18] sm:$0xff] (%p71_p3)  ;;  %v276_v1 = vld [vmem:[%s1444_s18 + $0x8] sm:$0xff] (%p71_p3)  ;;  %v278_v2 = vld [vmem:[%s1444_s18 + $0x10] sm:$0xff] (%p71_p3) }
  0x16   : > { %275 = vst [vmem:[%s258_s19] sm:$0xff] (%p71_p3), %v274_v0  ;;  %v280_v3 = vld [vmem:[%s1444_s18 + $0x18] sm:$0xff] (%p71_p3)  ;;  %v282_v4 = vld [vmem:[%s1444_s18 + $0x80] sm:$0xff] (%p71_p3)  ;;  %v284_v5 = vld [vmem:[%s1444_s18 + $0x88] sm:$0xff] (%p71_p3) }
  0x17   : > { %277 = vst [vmem:[%s258_s19 + $0x8] sm:$0xff] %v276_v1  ;;  %v286_v6 = vld [vmem:[%s1444_s18 + $0x90] sm:$0xff]  ;;  %v288_v7 = vld [vmem:[%s1444_s18 + $0x98] sm:$0xff]  ;;  %v290_v8 = vld [vmem:[%s1444_s18 + $0x100] sm:$0xff] }
  0x18   : > { %279 = vst [vmem:[%s258_s19 + $0x10] sm:$0xff] %v278_v2  ;;  %v292_v9 = vld [vmem:[%s1444_s18 + $0x108] sm:$0xff]  ;;  %v294_v10 = vld [vmem:[%s1444_s18 + $0x110] sm:$0xff]  ;;  %v296_v11 = vld [vmem:[%s1444_s18 + $0x118] sm:$0xff] }
  0x19   : > { %281 = vst [vmem:[%s258_s19 + $0x18] sm:$0xff] %v280_v3  ;;  %v298_v12 = vld [vmem:[%s1444_s18 + $0x180] sm:$0xff]  ;;  %v300_v13 = vld [vmem:[%s1444_s18 + $0x188] sm:$0xff]  ;;  %v302_v14 = vld [vmem:[%s1444_s18 + $0x190] sm:$0xff] }
  0x1a   : > { %283 = vst [vmem:[%s258_s19 + $0x20] sm:$0xff] %v282_v4  ;;  %v304_v15 = vld [vmem:[%s1444_s18 + $0x198] sm:$0xff] }
  0x1b   : > { %285 = vst [vmem:[%s258_s19 + $0x28] sm:$0xff] %v284_v5 }
  0x1c   : > { %287 = vst [vmem:[%s258_s19 + $0x30] sm:$0xff] %v286_v6 }
  0x1d   : > { %289 = vst [vmem:[%s258_s19 + $0x38] sm:$0xff] %v288_v7 }
  0x1e   : > { %291 = vst [vmem:[%s258_s19 + $0x40] sm:$0xff] %v290_v8 }
  0x1f   : > { %293 = vst [vmem:[%s258_s19 + $0x48] sm:$0xff] %v292_v9 }
  0x20   : > { %295 = vst [vmem:[%s258_s19 + $0x50] sm:$0xff] %v294_v10 }
  0x21   : > { %297 = vst [vmem:[%s258_s19 + $0x58] sm:$0xff] %v296_v11 }
  0x22   : > { %299 = vst [vmem:[%s258_s19 + $0x60] sm:$0xff] %v298_v12 }
  0x23   : > { %301 = vst [vmem:[%s258_s19 + $0x68] sm:$0xff] %v300_v13 }
  0x24   : > { %303 = vst [vmem:[%s258_s19 + $0x70] sm:$0xff] %v302_v14 }
  0x25   : > { %305 = vst [vmem:[%s258_s19 + $0x78] sm:$0xff] %v304_v15 }
  0x26 PF: > { %p1158_p7 = scmp.ge.s32.totalorder %s1342_s30, 1  ;;  %p310_p8 = scmp.lt.s32.totalorder %s1342_s30, 9 }
  0x28   : > { %p311_p9 = pnand %p1158_p7, %p310_p8 }
  0x29   : > { %p357_p10 = scmp.lt.s32.totalorder (!%p311_p9), %s1330_s27, 1  ;;  %s317_s15 = sand.u32 (!%p311_p9), 1, %s1318_s24  }
  0x2a   : > { %314 = sbr.rel (%p311_p9) target bundleno = 824 (0x338), region = 67  ;;  %s1159_s16 = sshll.u32 (!%p311_p9), %s317_s15, 7 }
  0x2b   : > { %s1497_s17 = scalar_lea.vmem (!%p311_p9), [#allocation2], %s1159_s16  ;;  %s1162_s21 = sshll.u32 (!%p311_p9), %s1326_s26, 2 }
  0x2c   : > { %p366_p11 = scmp.lt.s32.totalorder (!%p311_p9), %s1162_s21, 15 }
  0x2f   : > { %v1344_v16 = vmov 0   ;;  %s1676_s27 = smov (!%p357_p10, %s1330_s27), 1  ;;  %v1487_v21 = vld [vmem:[%s1661_s6 + $0x8] sm:$0xff]  ;;  %v1492_v22 = vld [vmem:[%s1661_s6] sm:$0xff]  ;;  %v391_v25 = vld [vmem:[%s1497_s17 + $0x70] sm:$0xff]  ;;  %vm473_vm0 = vcmask 261120  }
  0x30   : > { %1281 = vset.pattern.permute.xlu1 %v1344_v16  ;;  %1280 = vset.pattern.permute.xlu0 %v1344_v16  ;;  %s1220_s20 = sshll.u32 %s1676_s27, 5  ;;  %v389_v23 = vld [vmem:[%s1497_s17 + $0x60] sm:$0xff]  ;;  %v390_v24 = vld [vmem:[%s1497_s17 + $0x68] sm:$0xff]  ;;  %v392_v26 = vld [vmem:[%s1497_s17 + $0x78] sm:$0xff]  ;;  %s1678_s21 = smov (!%p366_p11, %s1162_s21), 15  ;;  %vm1042_vm1 = vcmask 1043456  }
  0x31   : > { %1282 = vset.pattern.permute.xlu2 %v1344_v16  ;;  %s361_s23 = scalar_lea.vmem %s1655_s0, %s1220_s20  ;;  %v381_v37 = vld [vmem:[%s1497_s17 + $0x20] sm:$0xff]  ;;  %v382_v39 = vld [vmem:[%s1497_s17 + $0x28] sm:$0xff]  ;;  %v383_v40 = vld [vmem:[%s1497_s17 + $0x30] sm:$0xff]  ;;  %s1163_s22 = sshll.u32 %s1676_s27, 4 }
  0x32   : > { %v1472_v17 = vld [vmem:[%s361_s23 + $0x18] sm:$0xff]  ;;  %v1474_v18 = vld [vmem:[%s361_s23 + $0x8] sm:$0xff]  ;;  %v1478_v19 = vld [vmem:[%s361_s23 + $0x10] sm:$0xff] }
  0x33   : > { %410 = vperm.xlu0 %1280, %v1472_v17   ;;  %400 = vperm.xlu1 %1281, %v1474_v18   ;;  %v1480_v20 = vld [vmem:[%s361_s23] sm:$0xff]  ;;  %v386_v41 = vld [vmem:[%s1497_s17 + $0x48] sm:$0xff]  ;;  %v387_v42 = vld [vmem:[%s1497_s17 + $0x50] sm:$0xff]  ;;  %s369_s23 = sadd.s32 %s1163_s22, %s1678_s21 }
  0x34   : > { %v385_v38 = vld [vmem:[%s1497_s17 + $0x40] sm:$0xff]  ;;  %v388_v43 = vld [vmem:[%s1497_s17 + $0x58] sm:$0xff]  ;;  %v378_v46 = vld [vmem:[%s1497_s17 + $0x8] sm:$0xff]  ;;  %s1164_s10 = sshll.u32 %s369_s23, 2 }
  0x35   : > { %v384_v44 = vld [vmem:[%s1497_s17 + $0x38] sm:$0xff]  ;;  %v377_v45 = vld [vmem:[%s1497_s17] sm:$0xff]  ;;  %v379_v55 = vld [vmem:[%s1497_s17 + $0x10] sm:$0xff]  ;;  %s371_s14 = scalar_lea.vmem %s1662_s7, %s1164_s10 }
  0x36   : > { %v380_v56 = vld [vmem:[%s1497_s17 + $0x18] sm:$0xff]  ;;  %v445_v11 = vld [vmem:[%s1657_s2] sm:$0xff]  ;;  %v446_v13 = vld [vmem:[%s1657_s2 + $0x8] sm:$0xff] }
  0x37   : > { %v1521_v12 = vld [vmem:[%s1661_s6 + $0x18] sm:$0xff]  ;;  %v1534_v14 = vld [vmem:[%s1661_s6 + $0x10] sm:$0xff] }
  0x38   : > { %470 = vperm.xlu2 %1282, %v1521_v12   ;;  %v447_v15 = vld [vmem:[%s1657_s2 + $0x10] sm:$0xff]  ;;  %v448_v16 = vld [vmem:[%s1657_s2 + $0x18] sm:$0xff] }
  0x3b   : > { %405 = vperm.xlu0 %1280, %v1478_v19   ;;  %395 = vperm.xlu1 %1281, %v1480_v20  }
  0x40   : > { %465 = vperm.xlu2 %1282, %v1534_v14  }
  0x43   : > { %460 = vperm.xlu0 %1280, %v1487_v21   ;;  %455 = vperm.xlu1 %1281, %v1492_v22  }
  0xa5   : > { %v411_v27 = vpop.permute.xlu0 %410  ;;  %v401_v28 = vpop.permute.xlu1 %400 }
  0xa6   : > { %v425_v29 = vadd.f32 %v411_v27, %v389_v23  ;;  %v426_v30 = vadd.f32 %v411_v27, %v390_v24  ;;  %v427_v31 = vadd.f32 %v411_v27, %v391_v25  ;;  %v428_v32 = vadd.f32 %v411_v27, %v392_v26 }
  0xa7   : > { %v417_v49 = vadd.f32 %v401_v28, %v381_v37  ;;  %v418_v50 = vadd.f32 %v401_v28, %v382_v39  ;;  %v419_v57 = vadd.f32 %v401_v28, %v383_v40  ;;  %v420_v58 = vadd.f32 %v401_v28, %v384_v44 }
  0xa8   : > { %v441_v33 = vmax.f32 %v425_v29, 0.0  ;;  %v442_v34 = vmax.f32 %v426_v30, 0.0  ;;  %v443_v35 = vmax.f32 %v427_v31, 0.0  ;;  %v444_v36 = vmax.f32 %v428_v32, 0.0  ;;  %v471_v29 = vpop.permute.xlu2 %470 }
  0xa9   : > { %v433_v3 = vmax.f32 %v417_v49, 0.0  ;;  %v434_v4 = vmax.f32 %v418_v50, 0.0  ;;  %v435_v5 = vmax.f32 %v419_v57, 0.0  ;;  %v436_v6 = vmax.f32 %v420_v58, 0.0 }
  0xaa   : > { %498 = vmatpush.msra.mxu0 %v441_v33  ;;  %527 = vmatpush.msra.mxu1 %v442_v34 }
  0xab   : > { %556 = vmatpush.msra.mxu2 %v443_v35  ;;  %585 = vmatpush.msra.mxu3 %v444_v36 }
  0xad   : > { %v406_v47 = vpop.permute.xlu0 %405  ;;  %v396_v48 = vpop.permute.xlu1 %395 }
  0xae   : > { %v421_v51 = vadd.f32 %v406_v47, %v385_v38  ;;  %v422_v52 = vadd.f32 %v406_v47, %v386_v41  ;;  %v423_v53 = vadd.f32 %v406_v47, %v387_v42  ;;  %v424_v54 = vadd.f32 %v406_v47, %v388_v43 }
  0xaf   : > { %v413_v59 = vadd.f32 %v396_v48, %v377_v45  ;;  %v414_v60 = vadd.f32 %v396_v48, %v378_v46  ;;  %v415_v1 = vadd.f32 %v396_v48, %v379_v55  ;;  %v416_v2 = vadd.f32 %v396_v48, %v380_v56 }
  0xb0   : > { %v437_v61 = vmax.f32 %v421_v51, 0.0  ;;  %v438_v62 = vmax.f32 %v422_v52, 0.0  ;;  %v439_v63 = vmax.f32 %v423_v53, 0.0  ;;  %v440_v0 = vmax.f32 %v424_v54, 0.0  ;;  %v466_v34 = vpop.permute.xlu2 %465 }
  0xb1   : > { %v429_v7 = vmax.f32 %v413_v59, 0.0  ;;  %v430_v8 = vmax.f32 %v414_v60, 0.0  ;;  %v431_v9 = vmax.f32 %v415_v1, 0.0  ;;  %v432_v10 = vmax.f32 %v416_v2, 0.0 }
  0xb2   : > { %499 = vmatpush.msra.mxu0 %v437_v61  ;;  %528 = vmatpush.msra.mxu1 %v438_v62  ;;  %v1345_v53 = vmov 1  }
  0xb3   : > { %557 = vmatpush.msra.mxu2 %v439_v63  ;;  %586 = vmatpush.msra.mxu3 %v440_v0 }
  0xb4   : > { %500 = vmatpush.msra.mxu0 %v433_v3  ;;  %529 = vmatpush.msra.mxu1 %v434_v4  ;;  %v618_v4 = vld [vmem:[%s1658_s3] sm:$0xff] }
  0xb5   : > { %558 = vmatpush.msra.mxu2 %v435_v5  ;;  %587 = vmatpush.msra.mxu3 %v436_v6  ;;  %v461_v43 = vpop.permute.xlu0 %460  ;;  %v456_v44 = vpop.permute.xlu1 %455 }
  0xb6   : > { %501 = vmatpush.msra.mxu0 %v429_v7  ;;  %530 = vmatpush.msra.mxu1 %v430_v8 }
  0xb7   : > { %559 = vmatpush.msra.mxu2 %v431_v9  ;;  %588 = vmatpush.msra.mxu3 %v432_v10 }
  0xb8   : > { %1165 = vmatmul.msk.f32.vlgmr.msra.gmra.mxu0 %vm473_vm0, %v445_v11  ;;  %1169 = vmatmul.msk.f32.vlgmr.msra.gmra.mxu1 %vm473_vm0, %v445_v11 }
  0xb9   : > { %1173 = vmatmul.msk.f32.vlgmr.msra.gmra.mxu2 %vm473_vm0, %v445_v11  ;;  %1177 = vmatmul.msk.f32.vlgmr.msra.gmra.mxu3 %vm473_vm0, %v445_v11  ;;  %v619_v11 = vld [vmem:[%s1658_s3 + $0x8] sm:$0xff] }
  0xba   : > { %1285 = vset.pattern.permute.xlu1 %v1345_v53  ;;  %1284 = vset.pattern.permute.xlu0 %v1345_v53 }
  0xbb   : > { %627 = vperm.xlu1 %1285, %v1474_v18   ;;  %631 = vperm.xlu0 %1284, %v1478_v19  }
  0xbc   : > { %1283 = vset.pattern.permute.xlu2 %v1345_v53 }
  0xbd   : > { %635 = vperm.xlu2 %1283, %v1472_v17   ;;  %v620_v17 = vld [vmem:[%s1658_s3 + $0x10] sm:$0xff] }
  0xc0   : > { %1166 = vmatmul.msk.f32.gmra.mxu0 %vm473_vm0, %v446_v13  ;;  %1170 = vmatmul.msk.f32.gmra.mxu1 %vm473_vm0, %v446_v13 }
  0xc1   : > { %1174 = vmatmul.msk.f32.gmra.mxu2 %vm473_vm0, %v446_v13  ;;  %1178 = vmatmul.msk.f32.gmra.mxu3 %vm473_vm0, %v446_v13 }
  0xc3   : > { %799 = vperm.xlu1 %1285, %v1521_v12   ;;  %791 = vperm.xlu0 %1284, %v1487_v21  }
  0xc5   : > { %623 = vperm.xlu2 %1283, %v1480_v20   ;;  %v621_v20 = vld [vmem:[%s1658_s3 + $0x18] sm:$0xff] }
  0xc8   : > { %1167 = vmatmul.msk.f32.gmra.mxu0 %vm473_vm0, %v447_v15  ;;  %1171 = vmatmul.msk.f32.gmra.mxu1 %vm473_vm0, %v447_v15 }
  0xc9   : > { %1175 = vmatmul.msk.f32.gmra.mxu2 %vm473_vm0, %v447_v15  ;;  %1179 = vmatmul.msk.f32.gmra.mxu3 %vm473_vm0, %v447_v15 }
  0xcb   : > { %787 = vperm.xlu1 %1285, %v1492_v22  }
  0xcd   : > { %795 = vperm.xlu2 %1283, %v1534_v14  }
  0xd0   : > { %1168 = vmatmul.msk.f32.gmra.mxu0 %vm473_vm0, %v448_v16  ;;  %1172 = vmatmul.msk.f32.gmra.mxu1 %vm473_vm0, %v448_v16 }
  0xd1   : > { %1176 = vmatmul.msk.f32.gmra.mxu2 %vm473_vm0, %v448_v16  ;;  %1180 = vmatmul.msk.f32.gmra.mxu3 %vm473_vm0, %v448_v16 }
 0x135   : > { %v503_v23 = vpop.f32.mrf.mxu0  ;;  %v532_v24 = vpop.f32.mrf.mxu1 }
 0x136   : > { %v504_v49 = vadd.f32 %v503_v23, %v456_v44  ;;  %v533_v50 = vadd.f32 %v532_v24, %v456_v44  ;;  %v636_v24 = vpop.permute.xlu2 %635 }
 0x138   : > { %v602_v62 = vmax.f32 %v504_v49, 0.0  ;;  %v603_v63 = vmax.f32 %v533_v50, 0.0  ;;  %v782_v50 = vld [vmem:[%s1659_s4] sm:$0xff] }
 0x13c   : > { %v561_v25 = vpop.f32.mrf.mxu2  ;;  %v590_v26 = vpop.f32.mrf.mxu3 }
 0x13d   : > { %v506_v27 = vpop.f32.mrf.mxu0  ;;  %v535_v28 = vpop.f32.mrf.mxu1  ;;  %v562_v5 = vadd.f32 %v561_v25, %v456_v44  ;;  %v591_v6 = vadd.f32 %v590_v26, %v456_v44 }
 0x13e   : > { %v507_v45 = vadd.f32 %v506_v27, %v461_v43  ;;  %v536_v46 = vadd.f32 %v535_v28, %v461_v43  ;;  %v632_v25 = vpop.permute.xlu0 %631  ;;  %v628_v28 = vpop.permute.xlu1 %627 }
 0x13f   : > { %v604_v9 = vmax.f32 %v562_v5, 0.0  ;;  %v605_v10 = vmax.f32 %v591_v6, 0.0  ;;  %v784_v6 = vld [vmem:[%s1659_s4 + $0x10] sm:$0xff] }
 0x140   : > { %v606_v54 = vmax.f32 %v507_v45, 0.0  ;;  %v607_v55 = vmax.f32 %v536_v46, 0.0 }
 0x144   : > { %v564_v30 = vpop.f32.mrf.mxu2  ;;  %v593_v31 = vpop.f32.mrf.mxu3 }
 0x145   : > { %v509_v32 = vpop.f32.mrf.mxu0  ;;  %v538_v33 = vpop.f32.mrf.mxu1  ;;  %v565_v0 = vadd.f32 %v564_v30, %v461_v43  ;;  %v594_v1 = vadd.f32 %v593_v31, %v461_v43 }
 0x146   : > { %v510_v41 = vadd.f32 %v509_v32, %v466_v34  ;;  %v539_v42 = vadd.f32 %v538_v33, %v466_v34 }
 0x147   : > { %v608_v19 = vmax.f32 %v565_v0, 0.0  ;;  %v609_v8 = vmax.f32 %v594_v1, 0.0  ;;  %v783_v1 = vld [vmem:[%s1659_s4 + $0x8] sm:$0xff] }
 0x148   : > { %v610_v51 = vmax.f32 %v510_v41, 0.0  ;;  %v611_v52 = vmax.f32 %v539_v42, 0.0 }
 0x14c   : > { %v567_v35 = vpop.f32.mrf.mxu2  ;;  %v596_v36 = vpop.f32.mrf.mxu3 }
 0x14d   : > { %v512_v37 = vpop.f32.mrf.mxu0  ;;  %v541_v38 = vpop.f32.mrf.mxu1  ;;  %v568_v56 = vadd.f32 %v567_v35, %v466_v34  ;;  %v597_v59 = vadd.f32 %v596_v36, %v466_v34 }
 0x14e   : > { %v513_v39 = vadd.f32 %v512_v37, %v471_v29  ;;  %v542_v40 = vadd.f32 %v541_v38, %v471_v29  ;;  %v624_v37 = vpop.permute.xlu2 %623 }
 0x14f   : > { %v612_v18 = vmax.f32 %v568_v56, 0.0  ;;  %v613_v7 = vmax.f32 %v597_v59, 0.0 }
 0x150   : > { %v614_v47 = vmax.f32 %v513_v39, 0.0  ;;  %v615_v48 = vmax.f32 %v542_v40, 0.0 }
 0x152   : > { %662 = vmatpush.msrb.mxu0 %v614_v47  ;;  %691 = vmatpush.msrb.mxu1 %v615_v48 }
 0x154   : > { %v570_v57 = vpop.f32.mrf.mxu2  ;;  %v599_v58 = vpop.f32.mrf.mxu3  ;;  %663 = vmatpush.msrb.mxu0 %v610_v51  ;;  %692 = vmatpush.msrb.mxu1 %v611_v52 }
 0x155   : > { %v571_v60 = vadd.f32 %v570_v57, %v471_v29  ;;  %v600_v61 = vadd.f32 %v599_v58, %v471_v29 }
 0x156   : > { %664 = vmatpush.msrb.mxu0 %v606_v54  ;;  %693 = vmatpush.msrb.mxu1 %v607_v55 }
 0x157   : > { %v616_v2 = vmax.f32 %v571_v60, 0.0  ;;  %v617_v3 = vmax.f32 %v600_v61, 0.0 }
 0x158   : > { %665 = vmatpush.msrb.mxu0 %v602_v62  ;;  %694 = vmatpush.msrb.mxu1 %v603_v63 }
 0x159   : > { %720 = vmatpush.msrb.mxu2 %v616_v2  ;;  %749 = vmatpush.msrb.mxu3 %v617_v3 }
 0x15a   : > { %1181 = vmatmul.msk.f32.vlgmr.msrb.gmra.mxu0 %vm473_vm0, %v618_v4  ;;  %1185 = vmatmul.msk.f32.vlgmr.msrb.gmra.mxu1 %vm473_vm0, %v618_v4 }
 0x15b   : > { %721 = vmatpush.msrb.mxu2 %v612_v18  ;;  %750 = vmatpush.msrb.mxu3 %v613_v7  ;;  %v785_v18 = vld [vmem:[%s1659_s4 + $0x18] sm:$0xff] }
 0x15d   : > { %722 = vmatpush.msrb.mxu2 %v608_v19  ;;  %751 = vmatpush.msrb.mxu3 %v609_v8 }
 0x15f   : > { %723 = vmatpush.msrb.mxu2 %v604_v9  ;;  %752 = vmatpush.msrb.mxu3 %v605_v10 }
 0x160   : > { %1189 = vmatmul.msk.f32.vlgmr.msrb.gmra.mxu2 %vm473_vm0, %v618_v4  ;;  %1193 = vmatmul.msk.f32.vlgmr.msrb.gmra.mxu3 %vm473_vm0, %v618_v4 }
 0x162   : > { %1182 = vmatmul.msk.f32.gmra.mxu0 %vm473_vm0, %v619_v11  ;;  %1186 = vmatmul.msk.f32.gmra.mxu1 %vm473_vm0, %v619_v11 }
 0x168   : > { %1190 = vmatmul.msk.f32.gmra.mxu2 %vm473_vm0, %v619_v11  ;;  %1194 = vmatmul.msk.f32.gmra.mxu3 %vm473_vm0, %v619_v11 }
 0x16a   : > { %1183 = vmatmul.msk.f32.gmra.mxu0 %vm473_vm0, %v620_v17  ;;  %1187 = vmatmul.msk.f32.gmra.mxu1 %vm473_vm0, %v620_v17 }
 0x170   : > { %1191 = vmatmul.msk.f32.gmra.mxu2 %vm473_vm0, %v620_v17  ;;  %1195 = vmatmul.msk.f32.gmra.mxu3 %vm473_vm0, %v620_v17  ;;  %v800_v17 = vpop.permute.xlu1 %799 }
 0x172   : > { %1184 = vmatmul.msk.f32.gmra.mxu0 %vm473_vm0, %v621_v20  ;;  %1188 = vmatmul.msk.f32.gmra.mxu1 %vm473_vm0, %v621_v20 }
 0x178   : > { %1192 = vmatmul.msk.f32.gmra.mxu2 %vm473_vm0, %v621_v20  ;;  %1196 = vmatmul.msk.f32.gmra.mxu3 %vm473_vm0, %v621_v20 }
 0x1d7   : > { %v667_v21 = vpop.f32.mrf.mxu0  ;;  %v696_v22 = vpop.f32.mrf.mxu1 }
 0x1d8   : > { %v668_v46 = vadd.f32 %v667_v21, %v624_v37  ;;  %v697_v47 = vadd.f32 %v696_v22, %v624_v37  ;;  %v947_v22 = vld [vmem:[%s1661_s6] sm:$0x7] }
 0x1da   : > { %v766_v48 = vmax.f32 %v668_v46, 0.0  ;;  %v767_v49 = vmax.f32 %v697_v47, 0.0 }
 0x1df   : > { %v670_v12 = vpop.f32.mrf.mxu0  ;;  %v699_v13 = vpop.f32.mrf.mxu1 }
 0x1e0   : > { %v671_v35 = vadd.f32 %v670_v12, %v628_v28  ;;  %v700_v36 = vadd.f32 %v699_v13, %v628_v28  ;;  %v796_v12 = vpop.permute.xlu2 %795  ;;  %v1346_v13 = vmov 2  }
 0x1e1   : > { %1286 = vset.pattern.permute.xlu2 %v1346_v13  ;;  %1287 = vset.pattern.permute.xlu0 %v1346_v13 }
 0x1e2   : > { %v770_v44 = vmax.f32 %v671_v35, 0.0  ;;  %v771_v45 = vmax.f32 %v700_v36, 0.0  ;;  %950 = vperm.xlu2 %1286, %v947_v22  }
 0x1e3   : > { %v725_v14 = vpop.f32.mrf.mxu2  ;;  %v754_v15 = vpop.f32.mrf.mxu3 }
 0x1e4   : > { %v726_v61 = vadd.f32 %v725_v14, %v624_v37  ;;  %v755_v62 = vadd.f32 %v754_v15, %v624_v37 }
 0x1e6   : > { %v768_v4 = vmax.f32 %v726_v61, 0.0  ;;  %v769_v5 = vmax.f32 %v755_v62, 0.0 }
 0x1e7   : > { %v673_v16 = vpop.f32.mrf.mxu0  ;;  %v702_v23 = vpop.f32.mrf.mxu1 }
 0x1e8   : > { %v674_v29 = vadd.f32 %v673_v16, %v632_v25  ;;  %v703_v30 = vadd.f32 %v702_v23, %v632_v25  ;;  %v792_v16 = vpop.permute.xlu0 %791 }
 0x1ea   : > { %v774_v40 = vmax.f32 %v674_v29, 0.0  ;;  %v775_v41 = vmax.f32 %v703_v30, 0.0 }
 0x1eb   : > { %v728_v26 = vpop.f32.mrf.mxu2  ;;  %v757_v27 = vpop.f32.mrf.mxu3 }
 0x1ec   : > { %v729_v57 = vadd.f32 %v728_v26, %v628_v28  ;;  %v758_v58 = vadd.f32 %v757_v27, %v628_v28 }
 0x1ee   : > { %v772_v2 = vmax.f32 %v729_v57, 0.0  ;;  %v773_v3 = vmax.f32 %v758_v58, 0.0 }
 0x1ef   : > { %v676_v31 = vpop.f32.mrf.mxu0  ;;  %v705_v32 = vpop.f32.mrf.mxu1 }
 0x1f0   : > { %v677_v33 = vadd.f32 %v676_v31, %v636_v24  ;;  %v706_v34 = vadd.f32 %v705_v32, %v636_v24 }
 0x1f2   : > { %v778_v38 = vmax.f32 %v677_v33, 0.0  ;;  %v779_v39 = vmax.f32 %v706_v34, 0.0  ;;  %v788_v33 = vpop.permute.xlu1 %787 }
 0x1f3   : > { %v731_v42 = vpop.f32.mrf.mxu2  ;;  %v760_v43 = vpop.f32.mrf.mxu3 }
 0x1f4   : > { %826 = vmatpush.msra.mxu0 %v778_v38  ;;  %855 = vmatpush.msra.mxu1 %v779_v39  ;;  %v732_v53 = vadd.f32 %v731_v42, %v632_v25  ;;  %v761_v54 = vadd.f32 %v760_v43, %v632_v25 }
 0x1f6   : > { %827 = vmatpush.msra.mxu0 %v774_v40  ;;  %856 = vmatpush.msra.mxu1 %v775_v41  ;;  %v776_v63 = vmax.f32 %v732_v53, 0.0  ;;  %v777_v0 = vmax.f32 %v761_v54, 0.0 }
 0x1f8   : > { %828 = vmatpush.msra.mxu0 %v770_v44  ;;  %857 = vmatpush.msra.mxu1 %v771_v45  ;;  %v946_v44 = vld [vmem:[%s1660_s5] sm:$0x7] }
 0x1fa   : > { %829 = vmatpush.msra.mxu0 %v766_v48  ;;  %858 = vmatpush.msra.mxu1 %v767_v49 }
 0x1fb   : > { %v734_v51 = vpop.f32.mrf.mxu2  ;;  %v763_v52 = vpop.f32.mrf.mxu3  ;;  %1197 = vmatmul.msk.f32.vlgmr.msra.gmra.mxu0 %vm473_vm0, %v782_v50  ;;  %1201 = vmatmul.msk.f32.vlgmr.msra.gmra.mxu1 %vm473_vm0, %v782_v50 }
 0x1fc   : > { %v735_v55 = vadd.f32 %v734_v51, %v636_v24  ;;  %v764_v56 = vadd.f32 %v763_v52, %v636_v24 }
 0x1fe   : > { %v780_v59 = vmax.f32 %v735_v55, 0.0  ;;  %v781_v60 = vmax.f32 %v764_v56, 0.0 }
 0x200   : > { %884 = vmatpush.msra.mxu2 %v780_v59  ;;  %913 = vmatpush.msra.mxu3 %v781_v60 }
 0x202   : > { %885 = vmatpush.msra.mxu2 %v776_v63  ;;  %914 = vmatpush.msra.mxu3 %v777_v0 }
 0x203   : > { %1198 = vmatmul.msk.f32.gmra.mxu0 %vm473_vm0, %v783_v1  ;;  %1202 = vmatmul.msk.f32.gmra.mxu1 %vm473_vm0, %v783_v1 }
 0x204   : > { %886 = vmatpush.msra.mxu2 %v772_v2  ;;  %915 = vmatpush.msra.mxu3 %v773_v3 }
 0x206   : > { %887 = vmatpush.msra.mxu2 %v768_v4  ;;  %916 = vmatpush.msra.mxu3 %v769_v5 }
 0x207   : > { %1205 = vmatmul.msk.f32.vlgmr.msra.gmra.mxu2 %vm473_vm0, %v782_v50  ;;  %1209 = vmatmul.msk.f32.vlgmr.msra.gmra.mxu3 %vm473_vm0, %v782_v50 }
 0x20b   : > { %1199 = vmatmul.msk.f32.gmra.mxu0 %vm473_vm0, %v784_v6  ;;  %1203 = vmatmul.msk.f32.gmra.mxu1 %vm473_vm0, %v784_v6 }
 0x20f   : > { %1206 = vmatmul.msk.f32.gmra.mxu2 %vm473_vm0, %v783_v1  ;;  %1210 = vmatmul.msk.f32.gmra.mxu3 %vm473_vm0, %v783_v1 }
 0x213   : > { %1200 = vmatmul.msk.f32.gmra.mxu0 %vm473_vm0, %v785_v18  ;;  %1204 = vmatmul.msk.f32.gmra.mxu1 %vm473_vm0, %v785_v18 }
 0x217   : > { %1207 = vmatmul.msk.f32.gmra.mxu2 %vm473_vm0, %v784_v6  ;;  %1211 = vmatmul.msk.f32.gmra.mxu3 %vm473_vm0, %v784_v6 }
 0x21f   : > { %1208 = vmatmul.msk.f32.gmra.mxu2 %vm473_vm0, %v785_v18  ;;  %1212 = vmatmul.msk.f32.gmra.mxu3 %vm473_vm0, %v785_v18 }
 0x23c   : > { %v951_v63 = vpop.permute.xlu2 %950 }
 0x278   : > { %v831_v7 = vpop.f32.mrf.mxu0  ;;  %v860_v19 = vpop.f32.mrf.mxu1 }
 0x279   : > { %v832_v34 = vadd.f32 %v831_v7, %v788_v33  ;;  %v861_v35 = vadd.f32 %v860_v19, %v788_v33 }
 0x27b   : > { %v930_v40 = vmax.f32 %v832_v34, 0.0  ;;  %v931_v41 = vmax.f32 %v861_v35, 0.0 }
 0x280   : > { %v834_v8 = vpop.f32.mrf.mxu0  ;;  %v863_v9 = vpop.f32.mrf.mxu1 }
 0x281   : > { %v835_v29 = vadd.f32 %v834_v8, %v792_v16  ;;  %v864_v30 = vadd.f32 %v863_v9, %v792_v16 }
 0x283   : > { %v934_v38 = vmax.f32 %v835_v29, 0.0  ;;  %v935_v39 = vmax.f32 %v864_v30, 0.0 }
 0x288   : > { %v837_v10 = vpop.f32.mrf.mxu0  ;;  %v866_v11 = vpop.f32.mrf.mxu1 }
 0x289   : > { %v838_v23 = vadd.f32 %v837_v10, %v796_v12  ;;  %v867_v24 = vadd.f32 %v866_v11, %v796_v12 }
 0x28a   : > { %v889_v20 = vpop.f32.mrf.mxu2  ;;  %v918_v21 = vpop.f32.mrf.mxu3 }
 0x28b   : > { %v938_v36 = vmax.f32 %v838_v23, 0.0  ;;  %v939_v37 = vmax.f32 %v867_v24, 0.0  ;;  %v890_v55 = vadd.f32 %v889_v20, %v788_v33  ;;  %v919_v56 = vadd.f32 %v918_v21, %v788_v33 }
 0x28d   : > { %v932_v61 = vmax.f32 %v890_v55, 0.0  ;;  %v933_v62 = vmax.f32 %v919_v56, 0.0 }
 0x290   : > { %v840_v14 = vpop.f32.mrf.mxu0  ;;  %v869_v15 = vpop.f32.mrf.mxu1 }
 0x291   : > { %v841_v25 = vadd.f32 %v840_v14, %v800_v17  ;;  %v870_v26 = vadd.f32 %v869_v15, %v800_v17 }
 0x292   : > { %v892_v27 = vpop.f32.mrf.mxu2  ;;  %v921_v28 = vpop.f32.mrf.mxu3 }
 0x293   : > { %v942_v31 = vmax.f32 %v841_v25, 0.0  ;;  %v943_v32 = vmax.f32 %v870_v26, 0.0  ;;  %v893_v51 = vadd.f32 %v892_v27, %v792_v16  ;;  %v922_v52 = vadd.f32 %v921_v28, %v792_v16 }
 0x295   : > { %968 = vmatpush.msrb.mxu0 %v942_v31  ;;  %988 = vmatpush.msrb.mxu1 %v943_v32  ;;  %v936_v59 = vmax.f32 %v893_v51, 0.0  ;;  %v937_v60 = vmax.f32 %v922_v52, 0.0 }
 0x297   : > { %969 = vmatpush.msrb.mxu0 %v938_v36  ;;  %989 = vmatpush.msrb.mxu1 %v939_v37 }
 0x299   : > { %970 = vmatpush.msrb.mxu0 %v934_v38  ;;  %990 = vmatpush.msrb.mxu1 %v935_v39 }
 0x29a   : > { %v895_v42 = vpop.f32.mrf.mxu2  ;;  %v924_v43 = vpop.f32.mrf.mxu3 }
 0x29b   : > { %971 = vmatpush.msrb.mxu0 %v930_v40  ;;  %991 = vmatpush.msrb.mxu1 %v931_v41  ;;  %v896_v47 = vadd.f32 %v895_v42, %v796_v12  ;;  %v925_v48 = vadd.f32 %v924_v43, %v796_v12 }
 0x29c   : > { %1214 = vmatmul.msk.f32.vlgmr.msrb.gmra.mxu1 %vm473_vm0, %v946_v44  ;;  %1213 = vmatmul.msk.f32.vlgmr.msrb.gmra.mxu0 %vm473_vm0, %v946_v44 }
 0x29d   : > { %v940_v57 = vmax.f32 %v896_v47, 0.0  ;;  %v941_v58 = vmax.f32 %v925_v48, 0.0 }
 0x2a2   : > { %v898_v45 = vpop.f32.mrf.mxu2  ;;  %v927_v46 = vpop.f32.mrf.mxu3 }
 0x2a3   : > { %v899_v49 = vadd.f32 %v898_v45, %v800_v17  ;;  %v928_v50 = vadd.f32 %v927_v46, %v800_v17 }
 0x2a5   : > { %v944_v53 = vmax.f32 %v899_v49, 0.0  ;;  %v945_v54 = vmax.f32 %v928_v50, 0.0 }
 0x2a7   : > { %1008 = vmatpush.msrb.mxu2 %v944_v53  ;;  %1028 = vmatpush.msrb.mxu3 %v945_v54 }
 0x2a9   : > { %1009 = vmatpush.msrb.mxu2 %v940_v57  ;;  %1029 = vmatpush.msrb.mxu3 %v941_v58 }
 0x2ab   : > { %1010 = vmatpush.msrb.mxu2 %v936_v59  ;;  %1030 = vmatpush.msrb.mxu3 %v937_v60 }
 0x2ad   : > { %1011 = vmatpush.msrb.mxu2 %v932_v61  ;;  %1031 = vmatpush.msrb.mxu3 %v933_v62 }
 0x2ae   : > { %1216 = vmatmul.msk.f32.vlgmr.msrb.gmra.mxu3 %vm473_vm0, %v946_v44  ;;  %1215 = vmatmul.msk.f32.vlgmr.msrb.gmra.mxu2 %vm473_vm0, %v946_v44 }
 0x319   : > { %v993_v0 = vpop.f32.mrf.mxu1  ;;  %v973_v1 = vpop.f32.mrf.mxu0 }
 0x31a   : > { %v994_v2 = vadd.f32 %v993_v0, %v951_v63  ;;  %v974_v3 = vadd.f32 %v973_v1, %v951_v63 }
 0x31c   : > { %v1040_v4 = vrot.slane %v994_v2, 4 }
 0x31e   : > { %v1043_v5 = vsel %vm1042_vm1, %v974_v3, %v1040_v4 }
 0x31f   : > { %1047 = vst [vmem:[%s371_s14] sm:$0x77] %v1043_v5 }
 0x331   : > { %v1033_v6 = vpop.f32.mrf.mxu3  ;;  %v1013_v18 = vpop.f32.mrf.mxu2 }
 0x332   : > { %v1034_v7 = vadd.f32 %v1033_v6, %v951_v63  ;;  %v1014_v8 = vadd.f32 %v1013_v18, %v951_v63 }
 0x334   : > { %v1041_v19 = vrot.slane %v1034_v7, 4 }
 0x336   : > { %v1044_v9 = vsel %vm1042_vm1, %v1014_v8, %v1041_v19 }
 0x337   : > { %1048 = vst [vmem:[%s371_s14 + $0x8] sm:$0x77] %v1044_v9 }
 0x338 PF: > { %s17_s30 = sadd.s32 1, %s1342_s30   ;;  %s1663_s24 = smov %s1322_s25 }
 0x339   : > { %p14_p12 = scmp.ge.s32.totalorder %s17_s30, 10   ;;  %s1664_s25 = smov %s1436_s12 }
 0x33a   : > { %s1665_s26 = smov %s1334_s28  ;;  %s1666_s27 = smov %s1338_s29 }
 0x33b   : > { %s1667_s28 = smov %s1670_s8  ;;  %s1668_s29 = smov %s1674_s9 }
 0x33c   :  { %16 = sbr.rel (!%p14_p12) target bundleno = 4 (0x4), region = 109 }

</bundles_post_ra>
